<compile_context>
chip_gen: v6e
topology: v6e:2x2x1
jax: 0.10.0
libtpu: 0.0.40
codegen_flags: <defaults>
</compile_context>

<pallas_src>
import math
from typing import NamedTuple

import jax
import jax.numpy as jnp
from jax.experimental import pallas as pl
from jax.experimental.pallas import tpu as pltpu

_LANE = 128
_NEG_SLOPE = 0.2
_MAX_BLOCK_M = 1024  # rows per tile cap; diminishing returns past this
_SINGLE_TC_KINDS = ("v5e", "v5 lite", "v5lite", "v6e", "v6 lite", "v6lite")


def _cdiv(a, b):
    return -(-a // b)


def _round_up(n, m):
    return _cdiv(n, m) * m


def _pad2(a, rows, cols):
    return jnp.pad(a, ((0, rows - a.shape[0]), (0, cols - a.shape[1])))


def _tensorcores_per_chip():
    # v5e / v6e expose one TensorCore per device; v4/v5p (megacore) and v7x
    # expose two, which dimension_semantics=("parallel",) can shard across.
    # Keep the grid >= 2 on 2-TC chips, collapse to 1 big tile on single-TC
    # chips (each grid step costs ~0.35 us of fixed overhead there).
    try:
        kind = jax.devices()[0].device_kind.lower()
    except Exception:
        return 2
    return 1 if any(t in kind for t in _SINGLE_TC_KINDS) else 2


def _pick_block_m(rows, n_cores):
    m8 = _round_up(max(rows, 8), 8)
    tiles = max(n_cores, _cdiv(m8, _MAX_BLOCK_M))
    return _round_up(_cdiv(m8, tiles), 8)


# ---------------------------------------------------------------------------
# Shape logic copied from LinearBlock.__init__
# ---------------------------------------------------------------------------
def _layer_dims(input_shape: int, output_shape: int):
    if input_shape == output_shape:
        rate = 1.0
    else:
        rate = 1.3 if input_shape < output_shape else 0.7

    def shape_at_layer(state):
        dim = int(input_shape * rate ** state)
        if output_shape > input_shape:
            return min(dim, output_shape)
        return max(dim, output_shape)

    d1 = shape_at_layer(1)   # dense_0 output
    d2 = shape_at_layer(2)   # dense_1 output
    return d1, d2            # dense_2 maps d2 -> output_shape


# ---------------------------------------------------------------------------
# Pallas kernel: whole 3-layer MLP for one (block_m, d_in) row tile
# ---------------------------------------------------------------------------
def _linear_block_kernel(x_ref, w0_ref, w1_ref, w2_ref, b2_ref, o_ref):
    # dense_0 (no bias) + LeakyReLU(0.2): cast x to the MXU dtype in-kernel,
    # accumulate in f32.  Leaky-ReLU as max(h, 0.2*h) (mul+max, exact for
    # slope < 1) instead of cmp+select+mul.
    x = x_ref[...].astype(w0_ref.dtype)
    h = jnp.dot(x, w0_ref[...], preferred_element_type=jnp.float32)
    h = jnp.maximum(h, _NEG_SLOPE * h)
    # dense_1 (no bias) + LeakyReLU(0.2)
    h = jnp.dot(h.astype(w1_ref.dtype), w1_ref[...],
                preferred_element_type=jnp.float32)
    h = jnp.maximum(h, _NEG_SLOPE * h)
    # dense_2 (with bias) — bias add in f32.
    h = jnp.dot(h.astype(w2_ref.dtype), w2_ref[...],
                preferred_element_type=jnp.float32)
    o_ref[...] = (h + b2_ref[...]).astype(o_ref.dtype)


# ---------------------------------------------------------------------------
# One-time parameter layout (hoisted out of the per-call path)
# ---------------------------------------------------------------------------
class LinearBlockParams(NamedTuple):
    w0_t: jax.Array   # (d_in , d1_p )  compute dtype, zero-padded cols
    w1_t: jax.Array   # (d1_p , d2_p )
    w2_t: jax.Array   # (d2_p , d_out_p)
    b2_p: jax.Array   # (1    , d_out_p) float32
    d_out: int        # logical output width


def prepare_params(w0, w1, w2, b2, *, compute_dtype=jnp.bfloat16):
    """One-time layout prep: transpose PyTorch (out,in) weights to (K,N), pad
    the N (and inner K) dims to the 128-lane boundary, cast to the MXU compute
    dtype, and pad/reshape the bias.  Call once at module init and reuse for
    every forward call — the per-call wrapper then has no weight-touching ops.

    Padding is exact: padded weight rows/cols and bias entries are zero and
    leaky_relu(0) == 0, so padded lanes stay zero through all three layers.
    The x contraction dim (d_in) is deliberately left unpadded.
    """
    d1, d_in = w0.shape
    d2 = w1.shape[0]
    d_out = w2.shape[0]
    d1_p = _round_up(d1, _LANE)
    d2_p = _round_up(d2, _LANE)
    d_out_p = _round_up(d_out, _LANE)
    w0_t = _pad2(w0.T, d_in, d1_p).astype(compute_dtype)
    w1_t = _pad2(w1.T, d1_p, d2_p).astype(compute_dtype)
    w2_t = _pad2(w2.T, d2_p, d_out_p).astype(compute_dtype)
    b2_p = jnp.pad(b2, (0, d_out_p - d_out)).reshape(1, d_out_p).astype(jnp.float32)
    return LinearBlockParams(w0_t, w1_t, w2_t, b2_p, d_out)


# ---------------------------------------------------------------------------
# Per-call wrapper
# ---------------------------------------------------------------------------
def linear_block(x, params, *, block_m=None, out_dtype=jnp.float32, unpad=True):
    """LinearBlock forward.

    x       : (..., d_in) float.  ALL leading dims (batch, RNN timesteps, ...)
              are folded into one row dimension -> one pallas_call per call,
              not one per timestep.
    params  : LinearBlockParams from prepare_params() (built once, reused).
    block_m : rows per grid step; default auto-picks per chip generation
              (grid=1 on single-TC v5e/v6e, >=2 parallel tiles on 2-TC chips).
    out_dtype: jnp.float32 (default) or jnp.bfloat16 (halves writeback, useful
              on v5e if the consumer accepts bf16).
    unpad   : if False, return the raw (m_p, d_out_p) lane-padded slab and
              skip the post-call slice/copy (fuse the slice into the consumer).
    """
    w0_t, w1_t, w2_t, b2_p, d_out = params
    *lead, d_in = x.shape
    if d_in != w0_t.shape[0]:
        raise ValueError(f"x last dim {d_in} != weight input dim {w0_t.shape[0]}")
    rows = math.prod(lead) if lead else 1
    x2 = x.reshape(rows, d_in)
    d_out_p = b2_p.shape[1]

    if block_m is None:
        block_m = _pick_block_m(rows, _tensorcores_per_chip())
    m_p = _round_up(rows, block_m)
    if m_p != rows:
        # Padded rows are zeros -> they compute to b2 and are sliced off below.
        x2 = jnp.pad(x2, ((0, m_p - rows), (0, 0)))

    # NOTE(scale-up): at the current 32/41/54/64 dims the weights plus one row
    # tile are a few hundred KiB of VMEM on every generation.  If the hidden
    # dims grow, re-derive the tiling against v7x's 64 MiB VMEM (32 MiB scoped
    # default): set vmem_limit_bytes via pltpu.CompilerParams, add a K grid
    # axis marked "arbitrary" with an f32 VMEM accumulator scratch instead of
    # keeping weights resident, and single-buffer the grid-invariant weight
    # blocks (pipeline_mode=pl.Buffered(1)) to halve their buffer footprint.
    out_p = pl.pallas_call(
        _linear_block_kernel,
        out_shape=jax.ShapeDtypeStruct((m_p, d_out_p), out_dtype),
        grid=(m_p // block_m,),
        in_specs=[
            pl.BlockSpec((block_m, d_in), lambda i: (i, 0)),  # x row tile, K unpadded
            pl.BlockSpec(w0_t.shape, lambda i: (0, 0)),       # weights / bias stay
            pl.BlockSpec(w1_t.shape, lambda i: (0, 0)),       # VMEM-resident across
            pl.BlockSpec(w2_t.shape, lambda i: (0, 0)),       # the whole grid
            pl.BlockSpec(b2_p.shape, lambda i: (0, 0)),
        ],
        out_specs=pl.BlockSpec((block_m, d_out_p), lambda i: (i, 0)),
        compiler_params=pltpu.CompilerParams(
            dimension_semantics=("parallel",)),  # row tiles shard across TCs on 2-TC chips
    )(x2, w0_t, w1_t, w2_t, b2_p)

    if not unpad:
        return out_p  # (m_p, d_out_p) lane-padded slab, no extra copy
    return out_p[:rows, :d_out].reshape(*lead, d_out)


# ---------------------------------------------------------------------------
# Deterministic parameter construction (synthetic, no checkpoint) + reference
# ---------------------------------------------------------------------------
def make_params(key, input_shape, output_shape):
    d1, d2 = _layer_dims(input_shape, output_shape)
    k0, k1, k2, kb = jax.random.split(key, 4)
    # PyTorch-style (out, in) weights.
    w0 = jax.random.normal(k0, (d1, input_shape), jnp.float32) / jnp.sqrt(input_shape)
    w1 = jax.random.normal(k1, (d2, d1), jnp.float32) / jnp.sqrt(d1)
    w2 = jax.random.normal(k2, (output_shape, d2), jnp.float32) / jnp.sqrt(d2)
    b2 = jax.random.normal(kb, (output_shape,), jnp.float32) * 0.01
    return w0, w1, w2, b2


def reference_forward(x, w0, w1, w2, b2):
    """Pure-JAX f32 reference mirroring the PyTorch module."""
    h = x @ w0.T
    h = jnp.where(h > 0, h, 0.2 * h)
    h = h @ w1.T
    h = jnp.where(h > 0, h, 0.2 * h)
    return h @ w2.T + b2


if __name__ == "__main__":
    input_shape, output_shape = 32, 64   # -> hidden dims 41, 54 (module logic)
    T, B = 8, 32                         # 8 RNN timesteps x batch 32 = 256 rows

    key = jax.random.PRNGKey(0)
    kx, kp = jax.random.split(key)
    x_seq = jax.random.normal(kx, (T, B, input_shape), jnp.float32)
    w0, w1, w2, b2 = make_params(kp, input_shape, output_shape)

    # One-time weight layout/cast, hoisted out of the per-call path.
    params = prepare_params(w0, w1, w2, b2)

    # All timesteps batched into the row dimension: ONE pallas_call for the
    # whole sequence instead of one launch per RNN step.
    out_seq = linear_block(x_seq, params)
    out_seq = jax.block_until_ready(out_seq)

    assert out_seq.shape == (T, B, output_shape)
    out = out_seq.reshape(T * B, output_shape)
    ref = reference_forward(x_seq.reshape(T * B, input_shape), w0, w1, w2, b2)
    # bf16 operands / f32 accumulation -> loosened tolerance vs f32 reference.
    assert jnp.allclose(out, ref, atol=5e-2, rtol=5e-2), (
        f"mismatch vs reference, max abs err {jnp.max(jnp.abs(out - ref))}")

    print("KERNEL_OK")
</pallas_src>

<mosaic_0001>
module attributes {stable_mosaic.version = 11 : i64} {
  func.func @_linear_block_kernel(%arg0: i32, %arg1: memref<128x32xf32, #tpu.memory_space<vmem>>, %arg2: memref<32x128xbf16, #tpu.memory_space<vmem>>, %arg3: memref<128x128xbf16, #tpu.memory_space<vmem>>, %arg4: memref<128x128xbf16, #tpu.memory_space<vmem>>, %arg5: memref<1x128xf32, #tpu.memory_space<vmem>>, %arg6: memref<128x128xf32, #tpu.memory_space<vmem>>) attributes {dimension_semantics = [#tpu.dimension_semantics<parallel>], iteration_bounds = array<i64: 2>, scalar_prefetch = 0 : i64, scratch_operands = 0 : i64, tpu.core_type = #tpu.core_type<tc>, window_params = [{transform_indices = @transform_0, window_bounds = array<i64: 128, 32>}, {pipeline_mode = #tpu.pipeline_mode<synchronous>, transform_indices = @transform_1, window_bounds = array<i64: 32, 128>}, {pipeline_mode = #tpu.pipeline_mode<synchronous>, transform_indices = @transform_2, window_bounds = array<i64: 128, 128>}, {pipeline_mode = #tpu.pipeline_mode<synchronous>, transform_indices = @transform_3, window_bounds = array<i64: 128, 128>}, {pipeline_mode = #tpu.pipeline_mode<synchronous>, transform_indices = @transform_4, window_bounds = array<i64: 1, 128>}, {transform_indices = @transform_5, window_bounds = array<i64: 128, 128>}]} {
    %c0 = arith.constant 0 : index
    %c0_0 = arith.constant 0 : index
    %0 = vector.load %arg1[%c0, %c0_0] : memref<128x32xf32, #tpu.memory_space<vmem>>, vector<128x32xf32>
    %1 = arith.truncf %0 : vector<128x32xf32> to vector<128x32xbf16>
    %c0_1 = arith.constant 0 : index
    %c0_2 = arith.constant 0 : index
    %2 = vector.load %arg2[%c0_1, %c0_2] : memref<32x128xbf16, #tpu.memory_space<vmem>>, vector<32x128xbf16>
    %cst = arith.constant dense<0.000000e+00> : vector<128x128xf32>
    %3 = tpu.matmul %1, %2, %cst {dimension_numbers = #tpu.dot_dimension_numbers<[1], [0], [0], [1], [0, 0, 1, 1], [], []>} : vector<128x32xbf16>, vector<32x128xbf16>, vector<128x128xf32> -> vector<128x128xf32>
    %cst_3 = arith.constant 2.000000e-01 : f32
    %4 = vector.broadcast %cst_3 : f32 to vector<128x128xf32>
    %5 = arith.mulf %4, %3 : vector<128x128xf32>
    %6 = arith.maximumf %3, %5 : vector<128x128xf32>
    %7 = arith.truncf %6 : vector<128x128xf32> to vector<128x128xbf16>
    %c0_4 = arith.constant 0 : index
    %c0_5 = arith.constant 0 : index
    %8 = vector.load %arg3[%c0_4, %c0_5] : memref<128x128xbf16, #tpu.memory_space<vmem>>, vector<128x128xbf16>
    %cst_6 = arith.constant dense<0.000000e+00> : vector<128x128xf32>
    %9 = tpu.matmul %7, %8, %cst_6 {dimension_numbers = #tpu.dot_dimension_numbers<[1], [0], [0], [1], [0, 0, 1, 1], [], []>} : vector<128x128xbf16>, vector<128x128xbf16>, vector<128x128xf32> -> vector<128x128xf32>
    %cst_7 = arith.constant 2.000000e-01 : f32
    %10 = vector.broadcast %cst_7 : f32 to vector<128x128xf32>
    %11 = arith.mulf %10, %9 : vector<128x128xf32>
    %12 = arith.maximumf %9, %11 : vector<128x128xf32>
    %13 = arith.truncf %12 : vector<128x128xf32> to vector<128x128xbf16>
    %c0_8 = arith.constant 0 : index
    %c0_9 = arith.constant 0 : index
    %14 = vector.load %arg4[%c0_8, %c0_9] : memref<128x128xbf16, #tpu.memory_space<vmem>>, vector<128x128xbf16>
    %cst_10 = arith.constant dense<0.000000e+00> : vector<128x128xf32>
    %15 = tpu.matmul %13, %14, %cst_10 {dimension_numbers = #tpu.dot_dimension_numbers<[1], [0], [0], [1], [0, 0, 1, 1], [], []>} : vector<128x128xbf16>, vector<128x128xbf16>, vector<128x128xf32> -> vector<128x128xf32>
    %c0_11 = arith.constant 0 : index
    %c0_12 = arith.constant 0 : index
    %16 = vector.load %arg5[%c0_11, %c0_12] : memref<1x128xf32, #tpu.memory_space<vmem>>, vector<1x128xf32>
    %17 = vector.broadcast %16 : vector<1x128xf32> to vector<128x128xf32>
    %18 = arith.addf %15, %17 : vector<128x128xf32>
    %c0_13 = arith.constant 0 : index
    %c0_14 = arith.constant 0 : index
    %19 = vector.load %arg6[%c0_13, %c0_14] : memref<128x128xf32, #tpu.memory_space<vmem>>, vector<128x128xf32>
    tpu.vector_store %arg6[%c0_13, %c0_14], %18 {strides = array<i32>} : memref<128x128xf32, #tpu.memory_space<vmem>>, vector<128x128xf32>,
    return
  }
  func.func @transform_0(%arg0: i32) -> (i32, i32) {
    %c0_i32 = arith.constant 0 : i32
    %c0_i32_0 = arith.constant 0 : i32
    return %arg0, %c0_i32 : i32, i32
  }
  func.func @transform_1(%arg0: i32) -> (i32, i32) {
    %c0_i32 = arith.constant 0 : i32
    %c0_i32_0 = arith.constant 0 : i32
    %c0_i32_1 = arith.constant 0 : i32
    return %c0_i32, %c0_i32_0 : i32, i32
  }
  func.func @transform_2(%arg0: i32) -> (i32, i32) {
    %c0_i32 = arith.constant 0 : i32
    %c0_i32_0 = arith.constant 0 : i32
    %c0_i32_1 = arith.constant 0 : i32
    return %c0_i32, %c0_i32_0 : i32, i32
  }
  func.func @transform_3(%arg0: i32) -> (i32, i32) {
    %c0_i32 = arith.constant 0 : i32
    %c0_i32_0 = arith.constant 0 : i32
    %c0_i32_1 = arith.constant 0 : i32
    return %c0_i32, %c0_i32_0 : i32, i32
  }
  func.func @transform_4(%arg0: i32) -> (i32, i32) {
    %c0_i32 = arith.constant 0 : i32
    %c0_i32_0 = arith.constant 0 : i32
    %c0_i32_1 = arith.constant 0 : i32
    return %c0_i32, %c0_i32_0 : i32, i32
  }
  func.func @transform_5(%arg0: i32) -> (i32, i32) {
    %c0_i32 = arith.constant 0 : i32
    %c0_i32_0 = arith.constant 0 : i32
    return %arg0, %c0_i32 : i32, i32
  }
}

</mosaic_0001>

<bundles_post_ra>
// kernel: tpu_custom_call.1
= control target key start
LH: loop header
LB: loop body
LE: loop exit
PB: predicated region body
PF: predicated region fallthrough
CT: control target
= control target key end

     0   :  { %10 = vsyncpa [#allocation3], 0  ;;  %s1417_s0 = inlined_call_operand.vmem [shape: f32[256,32], index: 0, kind: input, shape index: {}]   ;;  %s1418_s1 = inlined_call_operand.vmem [shape: bf16[32,128], index: 1, kind: input, shape index: {}]   ;;  %s1419_s2 = inlined_call_operand.vmem [shape: bf16[128,128], index: 2, kind: input, shape index: {}]   ;;  %s1420_s3 = inlined_call_operand.vmem [shape: bf16[128,128], index: 3, kind: input, shape index: {}]   ;;  %s1421_s4 = inlined_call_operand.vmem [shape: f32[1,128], index: 4, kind: input, shape index: {}]   ;;  %s1422_s5 = inlined_call_operand.hbm [shape: f32[256,128], index: 5, kind: output, shape index: {}]  }
   0x1   :  { %12 = vsyncpa [#allocation3 + $0x1], 0  ;;  %s1210_s18 = smov 0   ;;  %s1212_s19 = smov 0  }
   0x2   :  { %s1214_s20 = smov 0   ;;  %s1216_s21 = smov 0  }
   0x3 LB: > { %s1231_s22 = sadd.s32 4294967295, %s1175_s21   ;;  %s890_s23 = sadd.s32 4294967294, %s1175_s21   ;;  %s1175_s21 = sphi %s1216_s21, %s1428_s21   ;;  %s1171_s20 = sphi %s1214_s20, %s1427_s20   ;;  %s1167_s19 = sphi %s1212_s19, %s1426_s19   ;;  %s1163_s18 = sphi %s1210_s18, %s1425_s18  }
   0x4   : > { %s1235_s24 = sadd.s32 1, %s1175_s21   ;;  %s135_s25 = sadd.s32 1, %s1171_s20 }
   0x5   : > { %s132_s26 = ssub.s32 %s1175_s21, %s1235_s24  ;;  %p145_p0 = scmp.ne.s32.totalorder %s1171_s20, %s1167_s19 }
   0x6   : > { %p133_p1 = scmp.eq.s32.totalorder %s132_s26, 0  ;;  %p146_p2 = scmp.eq.s32.totalorder %s1231_s22, 1 }
   0x7   : > { %p151_p3 = scmp.ne.s32.totalorder %s1167_s19, %s1163_s18  ;;  %p152_p4 = scmp.eq.s32.totalorder %s890_s23, 1 }
   0x8   : > { %s1246_s27 = scalar_select %p133_p1, %s1171_s20, %s135_s25  }
   0x9   : > { %p1248_p5 = por %p146_p2, %p145_p0  ;;  %p1252_p6 = por %p152_p4, %p151_p3 }
   0xa   : > { %p893_p7 = scmp.ge.s32.totalorder %s1175_s21, 1  ;;  %p191_p8 = scmp.lt.s32.totalorder %s1175_s21, 3 }
   0xc   : > { %p192_p9 = pnand %p893_p7, %p191_p8 }
   0xd   : > { %s895_s7 = sshll.u32 (!%p192_p9), %s1231_s22, 4  ;;  %s929_s25 = sshll.u32 (!%p192_p9), %s1231_s22, 11 }
   0xe   : > { %195 = sbr.rel (%p192_p9) target bundleno = 679 (0x2a7), region = 40  ;;  %p220_p10 = scmp.lt.s32.totalorder (!%p192_p9), %s895_s7, 31 }
   0xf   : > { %s1177_s9 = smov (!%p192_p9), [#allocation2]  }
  0x10   : > { %s1119_s10 = sshll.u32 (!%p192_p9), %s1177_s9, 4  ;;  %s1120_s10 = int_to_ptr.vmem [resolvable:$false] %s1119_s10 }
  0x11   : > { %s1121_s11 = scalar_lea.vmem (!%p192_p9), %s1120_s10, 4096 }
  0x13   : > { %v1097_v0 = vld [vmem:[%s1418_s1 + $0x8] sm:$0xff]   ;;  %v1098_v1 = vld [vmem:[%s1418_s1] sm:$0xff]   ;;  %v1099_v2 = vld [vmem:[%s1419_s2 + $0x38] sm:$0xff]   ;;  %s1430_s7 = smov (!%p220_p10, %s895_s7), 31  ;;  %vm267_vm0 = vcmask 261120  }
  0x14   : > { %972 = vmatprep.subr.bf16.mxu0 %v1097_v0  ;;  %v1100_v3 = vld [vmem:[%s1419_s2 + $0x30] sm:$0xff]   ;;  %992 = vmatprep.subr.bf16.mxu1 %v1099_v2  ;;  %s896_s14 = sshll.u32 %s1430_s7, 3  ;;  %v1101_v4 = vld [vmem:[%s1419_s2 + $0x28] sm:$0xff]   ;;  %v1102_v14 = vld [vmem:[%s1419_s2 + $0x20] sm:$0xff]   ;;  %s1369_s7 = scalar_lea.hbm %s1422_s5, %s929_s25 }
  0x15   : > { %973 = vmatpush3.bf16.msra.mxu0 %v1097_v0  ;;  %993 = vmatpush3.bf16.msra.mxu1 %v1099_v2  ;;  %s1274_s17 = scalar_lea.vmem %s1417_s0, %s896_s14  ;;  %v1103_v19 = vld [vmem:[%s1419_s2 + $0x18] sm:$0xff]   ;;  %v1104_v31 = vld [vmem:[%s1419_s2 + $0x10] sm:$0xff]   ;;  %v1105_v32 = vld [vmem:[%s1419_s2 + $0x8] sm:$0xff]   ;;  %s216_s14 = sand.u32 1, %s1167_s19  }
  0x16   : > { %974 = vmatprep.subr.bf16.mxu0 %v1098_v1  ;;  %994 = vmatprep.subr.bf16.mxu1 %v1100_v3  ;;  %v227_v5 = vld [vmem:[%s1274_s17] sm:$0xff]  ;;  %v228_v6 = vld [vmem:[%s1274_s17 + $0x8] sm:$0xff]  ;;  %v229_v7 = vld [vmem:[%s1274_s17 + $0x10] sm:$0xff]  ;;  %s894_s15 = sshll.u32 %s216_s14, 7  ;;  %s1377_s22 = scalar_lea.sflag [#allocation3], %s216_s14 }
  0x17   : > { %v243_v8 = vpack.c.bf16 %v228_v6, %v227_v5  ;;  %v230_v9 = vld [vmem:[%s1274_s17 + $0x18] sm:$0xff]  ;;  %v231_v10 = vld [vmem:[%s1274_s17 + $0x20] sm:$0xff]  ;;  %v232_v11 = vld [vmem:[%s1274_s17 + $0x28] sm:$0xff]  ;;  %s1348_s23 = scalar_lea.vmem [#allocation2], %s894_s15 }
  0x18   : > { %v244_v12 = vpack.c.bf16 %v230_v9, %v229_v7  ;;  %v245_v13 = vpack.c.bf16 %v232_v11, %v231_v10  ;;  %v233_v15 = vld [vmem:[%s1274_s17 + $0x30] sm:$0xff]  ;;  %v234_v16 = vld [vmem:[%s1274_s17 + $0x38] sm:$0xff]  ;;  %v235_v17 = vld [vmem:[%s1274_s17 + $0x40] sm:$0xff]  ;;  %s828_s26 = sshll.u32 %s1348_s23, 4  ;;  %s1371_s26 = int_to_ptr.vmem [resolvable:$true] %s828_s26 }
  0x19   : > { %975 = vmatpush3.bf16.msra.mxu0 %v1098_v1  ;;  %995 = vmatpush3.bf16.msra.mxu1 %v1100_v3  ;;  %v236_v18 = vld [vmem:[%s1274_s17 + $0x48] sm:$0xff]  ;;  %v246_v20 = vpack.c.bf16 %v234_v16, %v233_v15  ;;  %v237_v22 = vld [vmem:[%s1274_s17 + $0x50] sm:$0xff]  ;;  %v238_v23 = vld [vmem:[%s1274_s17 + $0x58] sm:$0xff]  ;;  %s1115_s8 = scalar_lea.vmem %s1371_s26, 2048  ;;  %p1122_p0 = scmp.lt.s32.totalorder %s1371_s26, %s1120_s10 }
  0x1a   : > { %976 = vmatprep.mubr.msk.bf16.mxu0 %vm267_vm0, %v243_v8  ;;  %996 = vmatprep.subr.bf16.mxu1 %v1101_v4  ;;  %v247_v21 = vpack.c.bf16 %v236_v18, %v235_v17  ;;  %v239_v24 = vld [vmem:[%s1274_s17 + $0x60] sm:$0xff]  ;;  %v240_v25 = vld [vmem:[%s1274_s17 + $0x68] sm:$0xff]  ;;  %v248_v26 = vpack.c.bf16 %v238_v23, %v237_v22  ;;  %v241_v28 = vld [vmem:[%s1274_s17 + $0x70] sm:$0xff]  ;;  %p1116_p11 = scmp.ne.s32.totalorder %s1371_s26, %s1115_s8  ;;  %p1123_p1 = scmp.lt.s32.totalorder %s1121_s11, %s1115_s8 }
  0x1b   : > { %v249_v27 = vpack.c.bf16 %v240_v25, %v239_v24  ;;  %v242_v29 = vld [vmem:[%s1274_s17 + $0x78] sm:$0xff]  ;;  %v1106_v33 = vld [vmem:[%s1419_s2] sm:$0xff]   ;;  %v1108_v35 = vld [vmem:[%s1420_s3 + $0x30] sm:$0xff]  }
  0x1c   : > { %977 = vmatmul.mubr.msk.bf16.vlgmr.msra.gmra.mxu0 %vm267_vm0, %v244_v12  ;;  %v250_v30 = vpack.c.bf16 %v242_v29, %v241_v28  ;;  %v1107_v34 = vld [vmem:[%s1420_s3 + $0x38] sm:$0xff]   ;;  %v1109_v36 = vld [vmem:[%s1420_s3 + $0x28] sm:$0xff]   ;;  %v1110_v37 = vld [vmem:[%s1420_s3 + $0x20] sm:$0xff]   ;;  %p1117_p12 = pnand %p1116_p11, %p1248_p5  ;;  %p1124_p2 = por %p1123_p1, %p1122_p0 }
  0x1d   : > { %980 = vmatprep.mubr.msk.bf16.mxu0 %vm267_vm0, %v245_v13  ;;  %997 = vmatpush3.bf16.msra.mxu1 %v1101_v4  ;;  %v1111_v38 = vld [vmem:[%s1420_s3 + $0x18] sm:$0xff]  }
  0x1e   : > { %998 = vmatprep.subr.bf16.mxu1 %v1102_v14  ;;  %1024 = vmatprep.subr.bf16.mxu0 %v1107_v34  ;;  %p1118_p13 = pneg %p1117_p12 }
  0x1f   : > { %1025 = vmatpush3.bf16.msra.mxu0 %v1107_v34 }
  0x20   : > { %1026 = vmatprep.subr.bf16.mxu0 %v1108_v35  ;;  %p1125_p3 = pnand %p1124_p2, %p1118_p13 }
  0x21   : > { %999 = vmatpush3.bf16.msra.mxu1 %v1102_v14 }
  0x22   : > { %1000 = vmatprep.subr.bf16.mxu1 %v1103_v19 }
  0x23   : > { %1027 = vmatpush3.bf16.msra.mxu0 %v1108_v35 }
  0x24   : > { %981 = vmatmul.mubr.msk.bf16.gmra.mxu0 %vm267_vm0, %v246_v20  ;;  %1028 = vmatprep.subr.bf16.mxu0 %v1109_v36 }
  0x25   : > { %984 = vmatprep.mubr.msk.bf16.mxu0 %vm267_vm0, %v247_v21  ;;  %1001 = vmatpush3.bf16.msra.mxu1 %v1103_v19 }
  0x26   : > { %1002 = vmatprep.subr.bf16.mxu1 %v1104_v31 }
  0x27   : > { %1029 = vmatpush3.bf16.msra.mxu0 %v1109_v36 }
  0x28   : > { %1030 = vmatprep.subr.bf16.mxu0 %v1110_v37 }
  0x29   : > { %1003 = vmatpush3.bf16.msra.mxu1 %v1104_v31  ;;  %v1112_v31 = vld [vmem:[%s1420_s3 + $0x10] sm:$0xff]  }
  0x2a   : > { %1004 = vmatprep.subr.bf16.mxu1 %v1105_v32 }
  0x2b   : > { %1031 = vmatpush3.bf16.msra.mxu0 %v1110_v37 }
  0x2c   : > { %985 = vmatmul.mubr.msk.bf16.gmra.mxu0 %vm267_vm0, %v248_v26  ;;  %1032 = vmatprep.subr.bf16.mxu0 %v1111_v38 }
  0x2d   : > { %988 = vmatprep.mubr.msk.bf16.mxu0 %vm267_vm0, %v249_v27  ;;  %1005 = vmatpush3.bf16.msra.mxu1 %v1105_v32  ;;  %v1113_v32 = vld [vmem:[%s1420_s3 + $0x8] sm:$0xff]  }
  0x2e   : > { %1006 = vmatprep.subr.bf16.mxu1 %v1106_v33 }
  0x2f   : > { %1033 = vmatpush3.bf16.msra.mxu0 %v1111_v38 }
  0x30   : > { %1034 = vmatprep.subr.bf16.mxu0 %v1112_v31 }
  0x31   : > { %1007 = vmatpush3.bf16.msra.mxu1 %v1106_v33  ;;  %v1114_v33 = vld [vmem:[%s1420_s3] sm:$0xff]  }
  0x33   : > { %1035 = vmatpush3.bf16.msra.mxu0 %v1112_v31 }
  0x34   : > { %989 = vmatmul.mubr.msk.bf16.gmra.mxu0 %vm267_vm0, %v250_v30  ;;  %1036 = vmatprep.subr.bf16.mxu0 %v1113_v32 }
  0x37   : > { %1037 = vmatpush3.bf16.msra.mxu0 %v1113_v32 }
  0x38   : > { %1038 = vmatprep.subr.bf16.mxu0 %v1114_v33 }
  0x3b   : > { %1039 = vmatpush3.bf16.msra.mxu0 %v1114_v33 }
  0xdc   : > { %v978_v39 = vpop.f32.mrf.mxu0 }
  0xdd   : > { %v391_v44 = vmul.f32 0.2, %v978_v39 }
  0xde   : > { %v326_v40 = vpop.f32.mrf.mxu0 }
  0xdf   : > { %v389_v42 = vmul.f32 0.2, %v326_v40  ;;  %v407_v51 = vmax.f32 %v978_v39, %v391_v44 }
  0xe0   : > { %v979_v41 = vpop.f32.mrf.mxu0 }
  0xe1   : > { %v392_v43 = vmul.f32 0.2, %v979_v41  ;;  %v405_v49 = vmax.f32 %v326_v40, %v389_v42 }
  0xe2   : > { %v329_v45 = vpop.f32.mrf.mxu0 }
  0xe3   : > { %v390_v46 = vmul.f32 0.2, %v329_v45  ;;  %v408_v47 = vmax.f32 %v979_v41, %v392_v43 }
  0xe4   : > { %v982_v48 = vpop.f32.mrf.mxu0 }
  0xe5   : > { %v406_v50 = vmax.f32 %v329_v45, %v390_v46  ;;  %v422_v54 = vpack.c.bf16 %v408_v47, %v407_v51  ;;  %v395_v58 = vmul.f32 0.2, %v982_v48 }
  0xe6   : > { %v342_v52 = vpop.f32.mrf.mxu0 }
  0xe7   : > { %v421_v53 = vpack.c.bf16 %v406_v50, %v405_v49  ;;  %v393_v56 = vmul.f32 0.2, %v342_v52  ;;  %v411_v1 = vmax.f32 %v982_v48, %v395_v58 }
  0xe8   : > { %v983_v55 = vpop.f32.mrf.mxu0 }
  0xe9   : > { %v396_v57 = vmul.f32 0.2, %v983_v55  ;;  %1008 = vmatprep.mubr.bf16.mxu1 %v421_v53  ;;  %v409_v63 = vmax.f32 %v342_v52, %v393_v56 }
  0xea   : > { %v345_v59 = vpop.f32.mrf.mxu0  ;;  %1009 = vmatmul.mubr.bf16.vlgmr.msra.gmra.mxu1 %v422_v54 }
  0xeb   : > { %v394_v60 = vmul.f32 0.2, %v345_v59  ;;  %v412_v61 = vmax.f32 %v983_v55, %v396_v57 }
  0xec   : > { %v986_v62 = vpop.f32.mrf.mxu0 }
  0xed   : > { %v410_v0 = vmax.f32 %v345_v59, %v394_v60  ;;  %v424_v4 = vpack.c.bf16 %v412_v61, %v411_v1  ;;  %v399_v8 = vmul.f32 0.2, %v986_v62 }
  0xee   : > { %v358_v2 = vpop.f32.mrf.mxu0 }
  0xef   : > { %v423_v3 = vpack.c.bf16 %v410_v0, %v409_v63  ;;  %v397_v6 = vmul.f32 0.2, %v358_v2  ;;  %v415_v15 = vmax.f32 %v986_v62, %v399_v8 }
  0xf0   : > { %v987_v5 = vpop.f32.mrf.mxu0 }
  0xf1   : > { %v400_v7 = vmul.f32 0.2, %v987_v5  ;;  %1012 = vmatprep.mubr.bf16.mxu1 %v423_v3  ;;  %v413_v13 = vmax.f32 %v358_v2, %v397_v6 }
  0xf2   : > { %v361_v9 = vpop.f32.mrf.mxu0  ;;  %1013 = vmatmul.mubr.bf16.gmra.mxu1 %v424_v4 }
  0xf3   : > { %v398_v10 = vmul.f32 0.2, %v361_v9  ;;  %v416_v11 = vmax.f32 %v987_v5, %v400_v7 }
  0xf4   : > { %v990_v12 = vpop.f32.mrf.mxu0 }
  0xf5   : > { %v414_v14 = vmax.f32 %v361_v9, %v398_v10  ;;  %v426_v18 = vpack.c.bf16 %v416_v11, %v415_v15  ;;  %v403_v22 = vmul.f32 0.2, %v990_v12 }
  0xf6   : > { %v374_v16 = vpop.f32.mrf.mxu0 }
  0xf7   : > { %v425_v17 = vpack.c.bf16 %v414_v14, %v413_v13  ;;  %v401_v20 = vmul.f32 0.2, %v374_v16  ;;  %v419_v28 = vmax.f32 %v990_v12, %v403_v22 }
  0xf8   : > { %v991_v19 = vpop.f32.mrf.mxu0 }
  0xf9   : > { %v404_v21 = vmul.f32 0.2, %v991_v19  ;;  %1016 = vmatprep.mubr.bf16.mxu1 %v425_v17  ;;  %v417_v26 = vmax.f32 %v374_v16, %v401_v20 }
  0xfa   : > { %v377_v23 = vpop.f32.mrf.mxu0  ;;  %1017 = vmatmul.mubr.bf16.gmra.mxu1 %v426_v18 }
  0xfb   : > { %v402_v24 = vmul.f32 0.2, %v377_v23  ;;  %v420_v25 = vmax.f32 %v991_v19, %v404_v21 }
  0xfd   : > { %v418_v27 = vmax.f32 %v377_v23, %v402_v24  ;;  %v428_v30 = vpack.c.bf16 %v420_v25, %v419_v28 }
  0xff   : > { %v427_v29 = vpack.c.bf16 %v418_v27, %v417_v26  ;;  %v915_v26 = vld [vmem:[%s1421_s4] ss:$0 sm:$0xff] }
 0x101   : > { %1020 = vmatprep.mubr.bf16.mxu1 %v427_v29 }
 0x102   : > { %1021 = vmatmul.mubr.bf16.gmra.mxu1 %v428_v30 }
 0x1aa   : > { %v1010_v34 = vpop.f32.mrf.mxu1 }
 0x1ab   : > { %v592_v39 = vmul.f32 0.2, %v1010_v34 }
 0x1ac   : > { %v527_v35 = vpop.f32.mrf.mxu1 }
 0x1ad   : > { %v590_v37 = vmul.f32 0.2, %v527_v35  ;;  %v608_v46 = vmax.f32 %v1010_v34, %v592_v39 }
 0x1ae   : > { %v1011_v36 = vpop.f32.mrf.mxu1 }
 0x1af   : > { %v593_v38 = vmul.f32 0.2, %v1011_v36  ;;  %v606_v44 = vmax.f32 %v527_v35, %v590_v37 }
 0x1b0   : > { %v530_v40 = vpop.f32.mrf.mxu1 }
 0x1b1   : > { %v591_v41 = vmul.f32 0.2, %v530_v40  ;;  %v609_v42 = vmax.f32 %v1011_v36, %v593_v38 }
 0x1b2   : > { %v1014_v43 = vpop.f32.mrf.mxu1 }
 0x1b3   : > { %v607_v45 = vmax.f32 %v530_v40, %v591_v41  ;;  %v623_v49 = vpack.c.bf16 %v609_v42, %v608_v46  ;;  %v596_v53 = vmul.f32 0.2, %v1014_v43 }
 0x1b4   : > { %v543_v47 = vpop.f32.mrf.mxu1 }
 0x1b5   : > { %v622_v48 = vpack.c.bf16 %v607_v45, %v606_v44  ;;  %v594_v51 = vmul.f32 0.2, %v543_v47  ;;  %v612_v60 = vmax.f32 %v1014_v43, %v596_v53 }
 0x1b6   : > { %v1015_v50 = vpop.f32.mrf.mxu1 }
 0x1b7   : > { %v597_v52 = vmul.f32 0.2, %v1015_v50  ;;  %1040 = vmatprep.mubr.bf16.mxu0 %v622_v48  ;;  %v610_v58 = vmax.f32 %v543_v47, %v594_v51 }
 0x1b8   : > { %v546_v54 = vpop.f32.mrf.mxu1  ;;  %1041 = vmatmul.mubr.bf16.vlgmr.msra.gmra.mxu0 %v623_v49 }
 0x1b9   : > { %v595_v55 = vmul.f32 0.2, %v546_v54  ;;  %v613_v56 = vmax.f32 %v1015_v50, %v597_v52 }
 0x1ba   : > { %v1018_v57 = vpop.f32.mrf.mxu1 }
 0x1bb   : > { %v611_v59 = vmax.f32 %v546_v54, %v595_v55  ;;  %v625_v63 = vpack.c.bf16 %v613_v56, %v612_v60  ;;  %v600_v3 = vmul.f32 0.2, %v1018_v57 }
 0x1bc   : > { %v559_v61 = vpop.f32.mrf.mxu1 }
 0x1bd   : > { %v624_v62 = vpack.c.bf16 %v611_v59, %v610_v58  ;;  %v598_v1 = vmul.f32 0.2, %v559_v61  ;;  %v616_v10 = vmax.f32 %v1018_v57, %v600_v3 }
 0x1be   : > { %v1019_v0 = vpop.f32.mrf.mxu1 }
 0x1bf   : > { %v601_v2 = vmul.f32 0.2, %v1019_v0  ;;  %1044 = vmatprep.mubr.bf16.mxu0 %v624_v62  ;;  %v614_v8 = vmax.f32 %v559_v61, %v598_v1 }
 0x1c0   : > { %v562_v4 = vpop.f32.mrf.mxu1  ;;  %1045 = vmatmul.mubr.bf16.gmra.mxu0 %v625_v63 }
 0x1c1   : > { %v599_v5 = vmul.f32 0.2, %v562_v4  ;;  %v617_v6 = vmax.f32 %v1019_v0, %v601_v2 }
 0x1c2   : > { %v1022_v7 = vpop.f32.mrf.mxu1 }
 0x1c3   : > { %v615_v9 = vmax.f32 %v562_v4, %v599_v5  ;;  %v627_v13 = vpack.c.bf16 %v617_v6, %v616_v10  ;;  %v604_v17 = vmul.f32 0.2, %v1022_v7 }
 0x1c4   : > { %v575_v11 = vpop.f32.mrf.mxu1 }
 0x1c5   : > { %v626_v12 = vpack.c.bf16 %v615_v9, %v614_v8  ;;  %v602_v15 = vmul.f32 0.2, %v575_v11  ;;  %v620_v23 = vmax.f32 %v1022_v7, %v604_v17 }
 0x1c6   : > { %v1023_v14 = vpop.f32.mrf.mxu1 }
 0x1c7   : > { %v605_v16 = vmul.f32 0.2, %v1023_v14  ;;  %1048 = vmatprep.mubr.bf16.mxu0 %v626_v12  ;;  %v618_v21 = vmax.f32 %v575_v11, %v602_v15 }
 0x1c8   : > { %v578_v18 = vpop.f32.mrf.mxu1  ;;  %1049 = vmatmul.mubr.bf16.gmra.mxu0 %v627_v13 }
 0x1c9   : > { %v603_v19 = vmul.f32 0.2, %v578_v18  ;;  %v621_v20 = vmax.f32 %v1023_v14, %v605_v16 }
 0x1cb   : > { %v619_v22 = vmax.f32 %v578_v18, %v603_v19  ;;  %v629_v25 = vpack.c.bf16 %v621_v20, %v620_v23 }
 0x1cd   : > { %v628_v24 = vpack.c.bf16 %v619_v22, %v618_v21 }
 0x1cf   : > { %1052 = vmatprep.mubr.bf16.mxu0 %v628_v24 }
 0x1d0   : > { %1053 = vmatmul.mubr.bf16.gmra.mxu0 %v629_v25 }
 0x278   : > { %v1042_v27 = vpop.f32.mrf.mxu0 }
 0x279   : > { %v744_v28 = vadd.f32 %v1042_v27, %v915_v26 }
 0x27a   : > { %v735_v29 = vpop.f32.mrf.mxu0 }
 0x27b   : > { %800 = vst [vmem:[%s1348_s23 + $0x10] sm:$0xff] %v744_v28  ;;  %v736_v30 = vadd.f32 %v915_v26, %v735_v29 }
 0x27c   : > { %v1043_v31 = vpop.f32.mrf.mxu0 }
 0x27d   : > { %798 = vst [vmem:[%s1348_s23] sm:$0xff] %v736_v30  ;;  %v747_v32 = vadd.f32 %v1043_v31, %v915_v26 }
 0x27e   : > { %v738_v33 = vpop.f32.mrf.mxu0 }
 0x27f   : > { %801 = vst [vmem:[%s1348_s23 + $0x18] sm:$0xff] %v747_v32  ;;  %v739_v34 = vadd.f32 %v915_v26, %v738_v33 }
 0x280   : > { %v1046_v35 = vpop.f32.mrf.mxu0 }
 0x281   : > { %799 = vst [vmem:[%s1348_s23 + $0x8] sm:$0xff] %v739_v34  ;;  %v760_v36 = vadd.f32 %v1046_v35, %v915_v26 }
 0x282   : > { %v751_v37 = vpop.f32.mrf.mxu0 }
 0x283   : > { %804 = vst [vmem:[%s1348_s23 + $0x30] sm:$0xff] %v760_v36  ;;  %v752_v38 = vadd.f32 %v915_v26, %v751_v37 }
 0x284   : > { %v1047_v39 = vpop.f32.mrf.mxu0 }
 0x285   : > { %802 = vst [vmem:[%s1348_s23 + $0x20] sm:$0xff] %v752_v38  ;;  %v763_v40 = vadd.f32 %v1047_v39, %v915_v26 }
 0x286   : > { %v754_v41 = vpop.f32.mrf.mxu0 }
 0x287   : > { %805 = vst [vmem:[%s1348_s23 + $0x38] sm:$0xff] %v763_v40  ;;  %v755_v42 = vadd.f32 %v915_v26, %v754_v41 }
 0x288   : > { %v1050_v43 = vpop.f32.mrf.mxu0 }
 0x289   : > { %803 = vst [vmem:[%s1348_s23 + $0x28] sm:$0xff] %v755_v42  ;;  %v776_v44 = vadd.f32 %v1050_v43, %v915_v26 }
 0x28a   : > { %v767_v45 = vpop.f32.mrf.mxu0 }
 0x28b   : > { %808 = vst [vmem:[%s1348_s23 + $0x50] sm:$0xff] %v776_v44  ;;  %v768_v46 = vadd.f32 %v915_v26, %v767_v45 }
 0x28c   : > { %v1051_v47 = vpop.f32.mrf.mxu0 }
 0x28d   : > { %806 = vst [vmem:[%s1348_s23 + $0x40] sm:$0xff] %v768_v46  ;;  %v779_v48 = vadd.f32 %v1051_v47, %v915_v26 }
 0x28e   : > { %v770_v49 = vpop.f32.mrf.mxu0 }
 0x28f   : > { %809 = vst [vmem:[%s1348_s23 + $0x58] sm:$0xff] %v779_v48  ;;  %v771_v50 = vadd.f32 %v915_v26, %v770_v49 }
 0x290   : > { %v1054_v51 = vpop.f32.mrf.mxu0 }
 0x291   : > { %807 = vst [vmem:[%s1348_s23 + $0x48] sm:$0xff] %v771_v50  ;;  %v792_v52 = vadd.f32 %v1054_v51, %v915_v26 }
 0x292   : > { %v783_v53 = vpop.f32.mrf.mxu0 }
 0x293   : > { %812 = vst [vmem:[%s1348_s23 + $0x70] sm:$0xff] %v792_v52  ;;  %v784_v54 = vadd.f32 %v915_v26, %v783_v53 }
 0x294   : > { %v1055_v55 = vpop.f32.mrf.mxu0 }
 0x295   : > { %810 = vst [vmem:[%s1348_s23 + $0x60] sm:$0xff] %v784_v54  ;;  %v795_v56 = vadd.f32 %v1055_v55, %v915_v26 }
 0x296   : > { %v786_v57 = vpop.f32.mrf.mxu0 }
 0x297   : > { %813 = vst [vmem:[%s1348_s23 + $0x78] sm:$0xff] %v795_v56  ;;  %v787_v58 = vadd.f32 %v915_v26, %v786_v57 }
 0x299   : > { %811 = vst [vmem:[%s1348_s23 + $0x68] sm:$0xff] %v787_v58 }
 0x29a   : > { %1128 = shalt.err (!%p1125_p3)
}
 0x29b   : > { %s1129_s12 = scalar_lea.hbm %s1369_s7, 2048  ;;  %s1133_s15 = scalar_lea.hbm %s1422_s5, 4096 }
 0x29c   : > { %p1130_p4 = scmp.ne.s32.totalorder %s1369_s7, %s1129_s12  ;;  %p1134_p9 = scmp.lt.s32.totalorder %s1369_s7, %s1422_s5 }
 0x29d   : > { %p1135_p10 = scmp.lt.s32.totalorder %s1133_s15, %s1129_s12 }
 0x29e   : > { %p1131_p7 = pnand %p1130_p4, %p1248_p5 }
 0x29f   : > { %p1136_p11 = por %p1135_p10, %p1134_p9 }
 0x2a0   : > { %p1132_p8 = pneg %p1131_p7 }
 0x2a2   : > { %p1137_p12 = pnand %p1136_p11, %p1132_p8 }
 0x2a4   : > { %1140 = shalt.err (!%p1137_p12)
}
 0x2a5   : > { %s1178_s23 = smov 128   ;;  %s1179_s25 = smov 8  }
 0x2a6   : > { %1056 = dma.vmem_to_hbm [thread:$0]  (%p1248_p5), %s1371_s26, 2048, %s1369_s7, %s1377_s22, %s1178_s23, %s1178_s23, %s1179_s25  }
 0x2a7 PF: > { %p1062_p13 = scmp.ge.s32.totalorder %s1175_s21, 2  ;;  %s843_s30 = sand.u32 1, %s1163_s18  }
 0x2a8   : > { %s844_s6 = scalar_lea.sflag [#allocation3], %s843_s30 }
 0x2a9   : > { %p1059_p0 = pnand %p1062_p13, %p1252_p6 }
 0x2ab   : > { %p1060_p1 = pneg %p1059_p0 }
 0x2ad   : > { %1158 = dma.done.wait (%p1060_p1), %s844_s6, 2048  }
 0x2ae   : > { %1160 = vsyncadd (%p1060_p1), %s844_s6, 4294965248  ;;  %p15_p2 = scmp.ge.s32.totalorder %s1235_s24, 4   ;;  %s1425_s18 = smov %s1167_s19 }
 0x2af   : > { %s1426_s19 = smov %s1171_s20  ;;  %s1427_s20 = smov %s1246_s27 }
 0x2b0   : > { %s1428_s21 = smov %s1235_s24  ;;  %17 = sbr.rel (!%p15_p2) target bundleno = 3 (0x3), region = 75 }
 0x2b5   :  { %849 = vsyncpa [#allocation3], 1 }
 0x2b6   :  { %851 = vsyncpa [#allocation3 + $0x1], 1 }

</bundles_post_ra>
